<compile_context>
chip_gen: v6e
topology: v6e:2x2x1
jax: 0.10.0
libtpu: 0.0.40
codegen_flags: <defaults>
</compile_context>

<pallas_src>
import jax
import jax.numpy as jnp
from jax.experimental import pallas as pl
from jax.experimental.pallas import tpu as pltpu

HIDDEN = 256
_TM_MAX = 2048


def _round_up(x, m):
    return ((x + m - 1) // m) * m


def _choose_tm(n):
    """Batch-tile size: amortize ~0.35us/step overhead, keep >=2 parallel
    grid steps for mid/large N (v7x megacore), stay sublane/256-aligned."""
    if n <= 8:
        return n                              # full-extent row block
    if n < 16:
        return _round_up(n, 8)                # single step, tiny N
    half = (n + 1) // 2                       # >= 2 grid steps
    if n >= 512:
        return min(_TM_MAX, _round_up(half, 256))
    return _round_up(half, 8)


def _elementwise_dtype():
    """bf16 bias/ReLU on v6e/v7x (bf16 VPU); f32 on v5e and older."""
    try:
        kind = jax.devices()[0].device_kind.lower()
    except Exception:
        return jnp.float32
    if ("v6" in kind) or ("v7" in kind) or ("7x" in kind):
        return jnp.bfloat16
    return jnp.float32


def _qmlp_kernel(obs_ref, act_ref, w1o_ref, w1a_ref, b1_ref, w2_ref, b2_ref,
                 w3_ref, b3_ref, w4_ref, b4_ref, o_ref):
    ew = b1_ref.dtype          # elementwise dtype (bf16 on v6e/v7x, f32 on v5e)
    mm = w2_ref.dtype          # matmul operand dtype (bf16)

    # Layer 1: concat([obs, act]) @ W1 computed as two bf16 MXU dots
    # (no padded/concatenated copy of the input in HBM).
    h = jnp.dot(obs_ref[...], w1o_ref[...], preferred_element_type=jnp.float32)
    h = h + jnp.dot(act_ref[...], w1a_ref[...],
                    preferred_element_type=jnp.float32)
    h = jnp.maximum(h.astype(ew) + b1_ref[...], 0).astype(mm)

    # Layers 2 & 3 (256x256): bf16 operands, f32 MXU accumulation.
    h = jnp.dot(h, w2_ref[...], preferred_element_type=jnp.float32)
    h = jnp.maximum(h.astype(ew) + b2_ref[...], 0).astype(mm)
    h = jnp.dot(h, w3_ref[...], preferred_element_type=jnp.float32)
    h = jnp.maximum(h.astype(ew) + b3_ref[...], 0).astype(mm)

    # Layer 4 (256 -> 1) as an MXU "NT" matmul: (1,256) @ (TM,256)^T -> (1,TM).
    # Batch ends up in lanes, so the output store is lane-dense (no vst.msk).
    q = jax.lax.dot_general(
        w4_ref[...], h,
        dimension_numbers=(((1,), (1,)), ((), ())),
        preferred_element_type=jnp.float32)
    o_ref[...] = q + b4_ref[...]


def prepare_q_params(params, observation_dim, ew_dtype=None):
    """Once-per-parameter-set preprocessing, hoisted out of the forward call."""
    if ew_dtype is None:
        ew_dtype = _elementwise_dtype()
    w1 = jnp.asarray(params["w1"])
    return dict(
        w1o=w1[:observation_dim].astype(jnp.bfloat16),     # (obs_dim, 256)
        w1a=w1[observation_dim:].astype(jnp.bfloat16),      # (act_dim, 256)
        b1=jnp.asarray(params["b1"]).reshape(1, HIDDEN).astype(ew_dtype),
        w2=jnp.asarray(params["w2"]).astype(jnp.bfloat16),  # (256, 256)
        b2=jnp.asarray(params["b2"]).reshape(1, HIDDEN).astype(ew_dtype),
        w3=jnp.asarray(params["w3"]).astype(jnp.bfloat16),  # (256, 256)
        b3=jnp.asarray(params["b3"]).reshape(1, HIDDEN).astype(ew_dtype),
        w4=jnp.asarray(params["w4"]).reshape(1, HIDDEN).astype(jnp.bfloat16),
        b4=jnp.asarray(params["b4"]).reshape(1, 1).astype(jnp.float32),
    )


@jax.jit
def _qmlp_pallas(obs, act, prep):
    """obs: [N, obs_dim], act: [N, act_dim]  ->  q: [N]  (float32)."""
    N, obs_dim = obs.shape
    act_dim = act.shape[-1]

    TM = _choose_tm(N)
    num_tiles = pl.cdiv(N, TM)

    obs = obs.astype(jnp.bfloat16)
    act = act.astype(jnp.bfloat16)

    row = lambda i: (i, 0)       # batch-tiled arrays (and lane-dense output)
    const = lambda i: (0, 0)     # weights/biases: same block every step

    out = pl.pallas_call(
        _qmlp_kernel,
        out_shape=jax.ShapeDtypeStruct((num_tiles, TM), jnp.float32),
        grid=(num_tiles,),
        in_specs=[
            pl.BlockSpec((TM, obs_dim), row),
            pl.BlockSpec((TM, act_dim), row),
            pl.BlockSpec((obs_dim, HIDDEN), const),
            pl.BlockSpec((act_dim, HIDDEN), const),
            pl.BlockSpec((1, HIDDEN), const),
            pl.BlockSpec((HIDDEN, HIDDEN), const),
            pl.BlockSpec((1, HIDDEN), const),
            pl.BlockSpec((HIDDEN, HIDDEN), const),
            pl.BlockSpec((1, HIDDEN), const),
            pl.BlockSpec((1, HIDDEN), const),
            pl.BlockSpec((1, 1), const),
        ],
        out_specs=pl.BlockSpec((1, TM), row),
        compiler_params=pltpu.CompilerParams(
            dimension_semantics=("parallel",)),
    )(obs, act, prep["w1o"], prep["w1a"], prep["b1"], prep["w2"], prep["b2"],
      prep["w3"], prep["b3"], prep["w4"], prep["b4"])

    return out.reshape(-1)[:N]


def init_q_params(key, observation_dim, action_dim, n_hidden_layers=3):
    """Deterministic synthetic init (shapes match the torch module)."""
    dims = [observation_dim + action_dim] + [HIDDEN] * n_hidden_layers + [1]
    params = {}
    keys = jax.random.split(key, len(dims) - 1)
    for li, (din, dout) in enumerate(zip(dims[:-1], dims[1:])):
        # xavier-uniform-ish; last layer scaled by gain 0.01 (init_module_weights)
        limit = jnp.sqrt(6.0 / (din + dout))
        gain = 0.01 if li == len(dims) - 2 else 1.0
        w = gain * jax.random.uniform(keys[li], (din, dout), jnp.float32,
                                      -limit, limit)
        params[f"w{li + 1}"] = w
        params[f"b{li + 1}"] = jnp.zeros((dout,), jnp.float32)
    return params


def q_forward(prepared_params, observations, actions):
    """Mirrors FullyConnectedQFunction.forward (takes prepared params)."""
    multiple_actions = False
    batch_size = observations.shape[0]
    if actions.ndim == 3 and observations.ndim == 2:
        multiple_actions = True
        n_rep = actions.shape[1]
        observations = jnp.repeat(observations[:, None, :], n_rep, axis=1)
        observations = observations.reshape(-1, observations.shape[-1])
        actions = actions.reshape(-1, actions.shape[-1])
    q = _qmlp_pallas(observations, actions, prepared_params)  # [N]
    if multiple_actions:
        q = q.reshape(batch_size, -1)
    return q


def _q_forward_ref(params, observations, actions):
    """Pure-JAX f32 reference for correctness checking."""
    batch_size = observations.shape[0]
    multiple_actions = actions.ndim == 3 and observations.ndim == 2
    if multiple_actions:
        n_rep = actions.shape[1]
        observations = jnp.repeat(observations[:, None, :], n_rep, axis=1)
        observations = observations.reshape(-1, observations.shape[-1])
        actions = actions.reshape(-1, actions.shape[-1])
    h = jnp.concatenate([observations, actions], axis=-1)
    h = jnp.maximum(h @ params["w1"] + params["b1"], 0.0)
    h = jnp.maximum(h @ params["w2"] + params["b2"], 0.0)
    h = jnp.maximum(h @ params["w3"] + params["b3"], 0.0)
    q = (h @ params["w4"] + params["b4"])[..., 0]
    if multiple_actions:
        q = q.reshape(batch_size, -1)
    return q


def _assert_close(q, q_ref, rel=5e-2, floor=5e-4):
    """rtol-dominated check: tolerance scales with the Q-value magnitude
    (bf16 operands -> ~1-2% relative error expected)."""
    err = float(jnp.max(jnp.abs(q - q_ref)))
    scale = float(jnp.max(jnp.abs(q_ref)))
    assert err <= rel * scale + floor, (err, scale)


if __name__ == "__main__":
    key = jax.random.PRNGKey(0)
    k_param, k_obs, k_act, k_act3 = jax.random.split(key, 4)

    observation_dim = 17
    action_dim = 6
    batch = 4
    n_actions = 8

    params = init_q_params(k_param, observation_dim, action_dim,
                           n_hidden_layers=3)
    prep = prepare_q_params(params, observation_dim)   # hoisted, done once

    # Case 1: single action per observation -> q shape [batch]
    obs = jax.random.normal(k_obs, (batch, observation_dim), jnp.float32)
    act = jax.random.normal(k_act, (batch, action_dim), jnp.float32)
    q1 = jax.block_until_ready(q_forward(prep, obs, act))
    q1_ref = _q_forward_ref(params, obs, act)
    assert q1.shape == (batch,)
    _assert_close(q1, q1_ref)

    # Case 2: multiple actions per observation -> q shape [batch, n_actions]
    # (N = 32 here, which exercises the 2-step "parallel" grid path.)
    act3 = jax.random.normal(k_act3, (batch, n_actions, action_dim), jnp.float32)
    q2 = jax.block_until_ready(q_forward(prep, obs, act3))
    q2_ref = _q_forward_ref(params, obs, act3)
    assert q2.shape == (batch, n_actions)
    _assert_close(q2, q2_ref)

    print("KERNEL_OK")
</pallas_src>

<mosaic_0001>
module attributes {stable_mosaic.version = 11 : i64} {
  func.func @_qmlp_kernel(%arg0: i32, %arg1: memref<4x17xbf16, #tpu.memory_space<vmem>>, %arg2: memref<4x6xbf16, #tpu.memory_space<vmem>>, %arg3: memref<17x256xbf16, #tpu.memory_space<vmem>>, %arg4: memref<6x256xbf16, #tpu.memory_space<vmem>>, %arg5: memref<1x256xf32, #tpu.memory_space<vmem>>, %arg6: memref<256x256xbf16, #tpu.memory_space<vmem>>, %arg7: memref<1x256xf32, #tpu.memory_space<vmem>>, %arg8: memref<256x256xbf16, #tpu.memory_space<vmem>>, %arg9: memref<1x256xf32, #tpu.memory_space<vmem>>, %arg10: memref<1x256xbf16, #tpu.memory_space<vmem>>, %arg11: memref<1x1xf32, #tpu.memory_space<vmem>>, %arg12: memref<1x4xf32, #tpu.memory_space<vmem>>) attributes {dimension_semantics = [#tpu.dimension_semantics<parallel>], iteration_bounds = array<i64: 1>, scalar_prefetch = 0 : i64, scratch_operands = 0 : i64, tpu.core_type = #tpu.core_type<tc>, window_params = [{transform_indices = @transform_0, window_bounds = array<i64: 4, 17>}, {transform_indices = @transform_1, window_bounds = array<i64: 4, 6>}, {pipeline_mode = #tpu.pipeline_mode<synchronous>, transform_indices = @transform_2, window_bounds = array<i64: 17, 256>}, {pipeline_mode = #tpu.pipeline_mode<synchronous>, transform_indices = @transform_3, window_bounds = array<i64: 6, 256>}, {pipeline_mode = #tpu.pipeline_mode<synchronous>, transform_indices = @transform_4, window_bounds = array<i64: 1, 256>}, {pipeline_mode = #tpu.pipeline_mode<synchronous>, transform_indices = @transform_5, window_bounds = array<i64: 256, 256>}, {pipeline_mode = #tpu.pipeline_mode<synchronous>, transform_indices = @transform_6, window_bounds = array<i64: 1, 256>}, {pipeline_mode = #tpu.pipeline_mode<synchronous>, transform_indices = @transform_7, window_bounds = array<i64: 256, 256>}, {pipeline_mode = #tpu.pipeline_mode<synchronous>, transform_indices = @transform_8, window_bounds = array<i64: 1, 256>}, {pipeline_mode = #tpu.pipeline_mode<synchronous>, transform_indices = @transform_9, window_bounds = array<i64: 1, 256>}, {pipeline_mode = #tpu.pipeline_mode<synchronous>, transform_indices = @transform_10, window_bounds = array<i64: 1, 1>}, {transform_indices = @transform_11, window_bounds = array<i64: 1, 4>}]} {
    %c0 = arith.constant 0 : index
    %c0_0 = arith.constant 0 : index
    %0 = vector.load %arg1[%c0, %c0_0] : memref<4x17xbf16, #tpu.memory_space<vmem>>, vector<4x17xbf16>
    %c0_1 = arith.constant 0 : index
    %c0_2 = arith.constant 0 : index
    %1 = vector.load %arg3[%c0_1, %c0_2] : memref<17x256xbf16, #tpu.memory_space<vmem>>, vector<17x256xbf16>
    %cst = arith.constant dense<0.000000e+00> : vector<4x256xf32>
    %2 = tpu.matmul %0, %1, %cst {dimension_numbers = #tpu.dot_dimension_numbers<[1], [0], [0], [1], [0, 0, 1, 1], [], []>} : vector<4x17xbf16>, vector<17x256xbf16>, vector<4x256xf32> -> vector<4x256xf32>
    %c0_3 = arith.constant 0 : index
    %c0_4 = arith.constant 0 : index
    %3 = vector.load %arg2[%c0_3, %c0_4] : memref<4x6xbf16, #tpu.memory_space<vmem>>, vector<4x6xbf16>
    %c0_5 = arith.constant 0 : index
    %c0_6 = arith.constant 0 : index
    %4 = vector.load %arg4[%c0_5, %c0_6] : memref<6x256xbf16, #tpu.memory_space<vmem>>, vector<6x256xbf16>
    %cst_7 = arith.constant dense<0.000000e+00> : vector<4x256xf32>
    %5 = tpu.matmul %3, %4, %cst_7 {dimension_numbers = #tpu.dot_dimension_numbers<[1], [0], [0], [1], [0, 0, 1, 1], [], []>} : vector<4x6xbf16>, vector<6x256xbf16>, vector<4x256xf32> -> vector<4x256xf32>
    %6 = arith.addf %2, %5 : vector<4x256xf32>
    %c0_8 = arith.constant 0 : index
    %c0_9 = arith.constant 0 : index
    %7 = vector.load %arg5[%c0_8, %c0_9] : memref<1x256xf32, #tpu.memory_space<vmem>>, vector<1x256xf32>
    %8 = vector.broadcast %7 : vector<1x256xf32> to vector<4x256xf32>
    %9 = arith.addf %6, %8 : vector<4x256xf32>
    %cst_10 = arith.constant 0.000000e+00 : f32
    %10 = vector.broadcast %cst_10 : f32 to vector<4x256xf32>
    %11 = arith.maximumf %9, %10 : vector<4x256xf32>
    %12 = arith.truncf %11 : vector<4x256xf32> to vector<4x256xbf16>
    %c0_11 = arith.constant 0 : index
    %c0_12 = arith.constant 0 : index
    %13 = vector.load %arg6[%c0_11, %c0_12] : memref<256x256xbf16, #tpu.memory_space<vmem>>, vector<256x256xbf16>
    %cst_13 = arith.constant dense<0.000000e+00> : vector<4x256xf32>
    %14 = tpu.matmul %12, %13, %cst_13 {dimension_numbers = #tpu.dot_dimension_numbers<[1], [0], [0], [1], [0, 0, 1, 1], [], []>} : vector<4x256xbf16>, vector<256x256xbf16>, vector<4x256xf32> -> vector<4x256xf32>
    %c0_14 = arith.constant 0 : index
    %c0_15 = arith.constant 0 : index
    %15 = vector.load %arg7[%c0_14, %c0_15] : memref<1x256xf32, #tpu.memory_space<vmem>>, vector<1x256xf32>
    %16 = vector.broadcast %15 : vector<1x256xf32> to vector<4x256xf32>
    %17 = arith.addf %14, %16 : vector<4x256xf32>
    %cst_16 = arith.constant 0.000000e+00 : f32
    %18 = vector.broadcast %cst_16 : f32 to vector<4x256xf32>
    %19 = arith.maximumf %17, %18 : vector<4x256xf32>
    %20 = arith.truncf %19 : vector<4x256xf32> to vector<4x256xbf16>
    %c0_17 = arith.constant 0 : index
    %c0_18 = arith.constant 0 : index
    %21 = vector.load %arg8[%c0_17, %c0_18] : memref<256x256xbf16, #tpu.memory_space<vmem>>, vector<256x256xbf16>
    %cst_19 = arith.constant dense<0.000000e+00> : vector<4x256xf32>
    %22 = tpu.matmul %20, %21, %cst_19 {dimension_numbers = #tpu.dot_dimension_numbers<[1], [0], [0], [1], [0, 0, 1, 1], [], []>} : vector<4x256xbf16>, vector<256x256xbf16>, vector<4x256xf32> -> vector<4x256xf32>
    %c0_20 = arith.constant 0 : index
    %c0_21 = arith.constant 0 : index
    %23 = vector.load %arg9[%c0_20, %c0_21] : memref<1x256xf32, #tpu.memory_space<vmem>>, vector<1x256xf32>
    %24 = vector.broadcast %23 : vector<1x256xf32> to vector<4x256xf32>
    %25 = arith.addf %22, %24 : vector<4x256xf32>
    %cst_22 = arith.constant 0.000000e+00 : f32
    %26 = vector.broadcast %cst_22 : f32 to vector<4x256xf32>
    %27 = arith.maximumf %25, %26 : vector<4x256xf32>
    %28 = arith.truncf %27 : vector<4x256xf32> to vector<4x256xbf16>
    %c0_23 = arith.constant 0 : index
    %c0_24 = arith.constant 0 : index
    %29 = vector.load %arg10[%c0_23, %c0_24] : memref<1x256xbf16, #tpu.memory_space<vmem>>, vector<1x256xbf16>
    %cst_25 = arith.constant dense<0.000000e+00> : vector<1x4xf32>
    %30 = tpu.matmul %29, %28, %cst_25 {dimension_numbers = #tpu.dot_dimension_numbers<[1], [1], [0], [0], [0, 0, 1, 0], [], []>} : vector<1x256xbf16>, vector<4x256xbf16>, vector<1x4xf32> -> vector<1x4xf32>
    %c0_26 = arith.constant 0 : index
    %c0_27 = arith.constant 0 : index
    %31 = vector.load %arg11[%c0_26, %c0_27] : memref<1x1xf32, #tpu.memory_space<vmem>>, vector<1x1xf32>
    %32 = vector.broadcast %31 : vector<1x1xf32> to vector<1x4xf32>
    %33 = arith.addf %30, %32 : vector<1x4xf32>
    %c0_28 = arith.constant 0 : index
    %c0_29 = arith.constant 0 : index
    %34 = vector.load %arg12[%c0_28, %c0_29] : memref<1x4xf32, #tpu.memory_space<vmem>>, vector<1x4xf32>
    tpu.vector_store %arg12[%c0_28, %c0_29], %33 {strides = array<i32>} : memref<1x4xf32, #tpu.memory_space<vmem>>, vector<1x4xf32>,
    return
  }
  func.func @transform_0(%arg0: i32) -> (i32, i32) {
    %c0_i32 = arith.constant 0 : i32
    %c0_i32_0 = arith.constant 0 : i32
    return %arg0, %c0_i32 : i32, i32
  }
  func.func @transform_1(%arg0: i32) -> (i32, i32) {
    %c0_i32 = arith.constant 0 : i32
    %c0_i32_0 = arith.constant 0 : i32
    return %arg0, %c0_i32 : i32, i32
  }
  func.func @transform_2(%arg0: i32) -> (i32, i32) {
    %c0_i32 = arith.constant 0 : i32
    %c0_i32_0 = arith.constant 0 : i32
    %c0_i32_1 = arith.constant 0 : i32
    return %c0_i32, %c0_i32_0 : i32, i32
  }
  func.func @transform_3(%arg0: i32) -> (i32, i32) {
    %c0_i32 = arith.constant 0 : i32
    %c0_i32_0 = arith.constant 0 : i32
    %c0_i32_1 = arith.constant 0 : i32
    return %c0_i32, %c0_i32_0 : i32, i32
  }
  func.func @transform_4(%arg0: i32) -> (i32, i32) {
    %c0_i32 = arith.constant 0 : i32
    %c0_i32_0 = arith.constant 0 : i32
    %c0_i32_1 = arith.constant 0 : i32
    return %c0_i32, %c0_i32_0 : i32, i32
  }
  func.func @transform_5(%arg0: i32) -> (i32, i32) {
    %c0_i32 = arith.constant 0 : i32
    %c0_i32_0 = arith.constant 0 : i32
    %c0_i32_1 = arith.constant 0 : i32
    return %c0_i32, %c0_i32_0 : i32, i32
  }
  func.func @transform_6(%arg0: i32) -> (i32, i32) {
    %c0_i32 = arith.constant 0 : i32
    %c0_i32_0 = arith.constant 0 : i32
    %c0_i32_1 = arith.constant 0 : i32
    return %c0_i32, %c0_i32_0 : i32, i32
  }
  func.func @transform_7(%arg0: i32) -> (i32, i32) {
    %c0_i32 = arith.constant 0 : i32
    %c0_i32_0 = arith.constant 0 : i32
    %c0_i32_1 = arith.constant 0 : i32
    return %c0_i32, %c0_i32_0 : i32, i32
  }
  func.func @transform_8(%arg0: i32) -> (i32, i32) {
    %c0_i32 = arith.constant 0 : i32
    %c0_i32_0 = arith.constant 0 : i32
    %c0_i32_1 = arith.constant 0 : i32
    return %c0_i32, %c0_i32_0 : i32, i32
  }
  func.func @transform_9(%arg0: i32) -> (i32, i32) {
    %c0_i32 = arith.constant 0 : i32
    %c0_i32_0 = arith.constant 0 : i32
    %c0_i32_1 = arith.constant 0 : i32
    return %c0_i32, %c0_i32_0 : i32, i32
  }
  func.func @transform_10(%arg0: i32) -> (i32, i32) {
    %c0_i32 = arith.constant 0 : i32
    %c0_i32_0 = arith.constant 0 : i32
    %c0_i32_1 = arith.constant 0 : i32
    return %c0_i32, %c0_i32_0 : i32, i32
  }
  func.func @transform_11(%arg0: i32) -> (i32, i32) {
    %c0_i32 = arith.constant 0 : i32
    %c0_i32_0 = arith.constant 0 : i32
    return %arg0, %c0_i32 : i32, i32
  }
}

</mosaic_0001>

<bundles_post_ra>
// kernel: _qmlp_pallas.1
= control target key start
LH: loop header
LB: loop body
LE: loop exit
PB: predicated region body
PF: predicated region fallthrough
CT: control target
= control target key end

     0   :  { %s1318_s0 = inlined_call_operand.vmem [shape: bf16[4,17], index: 0, kind: input, shape index: {}]   ;;  %s1319_s1 = inlined_call_operand.vmem [shape: bf16[4,6], index: 1, kind: input, shape index: {}]   ;;  %s1320_s2 = inlined_call_operand.vmem [shape: bf16[17,256], index: 2, kind: input, shape index: {}]   ;;  %s1321_s3 = inlined_call_operand.hbm [shape: bf16[6,256], index: 3, kind: input, shape index: {}]   ;;  %s1322_s4 = inlined_call_operand.hbm [shape: f32[1,256], index: 4, kind: input, shape index: {}]   ;;  %s1323_s5 = inlined_call_operand.hbm [shape: bf16[256,256], index: 5, kind: input, shape index: {}]   ;;  %s1324_s6 = inlined_call_operand.hbm [shape: f32[1,256], index: 6, kind: input, shape index: {}]   ;;  %s1325_s7 = inlined_call_operand.hbm [shape: bf16[256,256], index: 7, kind: input, shape index: {}]   ;;  %s1326_s8 = inlined_call_operand.hbm [shape: f32[1,256], index: 8, kind: input, shape index: {}]   ;;  %s1327_s9 = inlined_call_operand.vmem [shape: bf16[1,256], index: 9, kind: input, shape index: {}]   ;;  %s1328_s10 = inlined_call_operand.<no memory space> [shape: f32[1,1], index: 10, kind: input, shape index: {}]   ;;  %s1329_s11 = inlined_call_operand.hbm [shape: f32[1,4], index: 11, kind: output, shape index: {}]  }
   0x1   :  { %v16_v0 = vstv %s1328_s10 }
   0x2   :  { %17 = vst [vmem:[#allocation2] sm:$0x1] %v16_v0 }
   0x3   :  { %18 = vsyncpa [#allocation4], 0 }
   0x4   :  { %19 = vsyncpa [#allocation7], 0 }
   0x5   :  { %20 = vsyncpa [#allocation10], 0 }
   0x6   :  { %21 = vsyncpa [#allocation13], 0 }
   0x7   :  { %22 = vsyncpa [#allocation5], 0  ;;  %s1199_s19 = smov [#allocation6]   ;;  %s1200_s21 = smov [#allocation9]  }
   0x8   :  { %s45_s20 = sshll.u32 %s1199_s19, 4  ;;  %s67_s22 = sshll.u32 %s1200_s21, 4  ;;  %s46_s20 = int_to_ptr.vmem [resolvable:$true] %s45_s20  ;;  %s68_s22 = int_to_ptr.vmem [resolvable:$true] %s67_s22 }
   0x9   :  { %s1057_s23 = scalar_lea.vmem %s46_s20, 32  ;;  %p1062_p1 = scmp.lt.s32.totalorder %s46_s20, %s46_s20 }
   0xa   :  { %p1058_p0 = scmp.ne.s32.totalorder %s46_s20, %s1057_s23  ;;  %p1063_p2 = scmp.lt.s32.totalorder %s1057_s23, %s1057_s23 }
   0xc   :  { %p1064_p3 = por %p1063_p2, %p1062_p1 }
   0xe   :  { %p1065_p4 = pnand %p1064_p3, %p1058_p0 }
  0x10   :  { %1068 = shalt.err (!%p1065_p4)
}
  0x11   :  { %48 = dma.hbm_to_vmem [thread:$0]  %s1322_s4, 32, %s46_s20, [#allocation7]  }
  0x12   :  { %s1077_s25 = scalar_lea.vmem %s68_s22, 32  ;;  %p1082_p6 = scmp.lt.s32.totalorder %s68_s22, %s68_s22 }
  0x13   :  { %p1078_p5 = scmp.ne.s32.totalorder %s68_s22, %s1077_s25  ;;  %p1083_p7 = scmp.lt.s32.totalorder %s1077_s25, %s1077_s25 }
  0x15   :  { %p1084_p8 = por %p1083_p7, %p1082_p6 }
  0x17   :  { %p1085_p9 = pnand %p1084_p8, %p1078_p5 }
  0x19   :  { %1088 = shalt.err (!%p1085_p9)
}
  0x1a   :  { %70 = dma.hbm_to_vmem [thread:$0]  %s1324_s6, 32, %s68_s22, [#allocation10]  }
  0x1b   :  { %s1201_s28 = smov [#allocation3]   ;;  %s1202_s30 = smov [#allocation8]  }
  0x1c   :  { %s35_s29 = sshll.u32 %s1201_s28, 4  ;;  %s54_s12 = sshll.u32 %s1202_s30, 4  ;;  %s36_s29 = int_to_ptr.vmem [resolvable:$true] %s35_s29  ;;  %s55_s12 = int_to_ptr.vmem [resolvable:$true] %s54_s12 }
  0x1d   :  { %s1097_s13 = scalar_lea.vmem %s36_s29, 128  ;;  %p1102_p11 = scmp.lt.s32.totalorder %s36_s29, %s36_s29 }
  0x1e   :  { %p1098_p10 = scmp.ne.s32.totalorder %s36_s29, %s1097_s13  ;;  %p1103_p12 = scmp.lt.s32.totalorder %s1097_s13, %s1097_s13 }
  0x20   :  { %p1104_p13 = por %p1103_p12, %p1102_p11 }
  0x22   :  { %p1105_p0 = pnand %p1104_p13, %p1098_p10 }
  0x24   :  { %1108 = shalt.err (!%p1105_p0)
}
  0x25   :  { %38 = dma.hbm_to_vmem [thread:$0]  %s1321_s3, 128, %s36_s29, [#allocation4]  }
  0x26   :  { %s1117_s15 = scalar_lea.vmem %s55_s12, 4096  ;;  %p1122_p2 = scmp.lt.s32.totalorder %s55_s12, %s55_s12 }
  0x27   :  { %p1118_p1 = scmp.ne.s32.totalorder %s55_s12, %s1117_s15  ;;  %p1123_p3 = scmp.lt.s32.totalorder %s1117_s15, %s1117_s15 }
  0x29   :  { %p1124_p4 = por %p1123_p3, %p1122_p2 }
  0x2b   :  { %p1125_p5 = pnand %p1124_p4, %p1118_p1 }
  0x2d   :  { %1128 = shalt.err (!%p1125_p5)
}
  0x2e   :  { %s1203_s6 = smov 128   ;;  %s1204_s16 = smov 8  }
  0x2f   :  { %60 = dma.hbm_to_vmem [thread:$0]  %s1323_s5, 4096, %s55_s12, [#allocation7], %s1203_s6, %s1203_s6, %s1204_s16  }
  0x30   :  { %s1205_s19 = smov [#allocation11]   ;;  %s1206_s21 = smov [#allocation12]  }
  0x31   :  { %s76_s20 = sshll.u32 %s1205_s19, 4  ;;  %s89_s22 = sshll.u32 %s1206_s21, 4  ;;  %s77_s20 = int_to_ptr.vmem [resolvable:$true] %s76_s20  ;;  %s90_s22 = int_to_ptr.vmem [resolvable:$true] %s89_s22 }
  0x32   :  { %s1137_s3 = scalar_lea.vmem %s77_s20, 4096  ;;  %p1142_p7 = scmp.lt.s32.totalorder %s77_s20, %s77_s20 }
  0x33   :  { %p1138_p6 = scmp.ne.s32.totalorder %s77_s20, %s1137_s3  ;;  %p1143_p8 = scmp.lt.s32.totalorder %s1137_s3, %s1137_s3 }
  0x35   :  { %p1144_p9 = por %p1143_p8, %p1142_p7 }
  0x37   :  { %p1145_p10 = pnand %p1144_p9, %p1138_p6 }
  0x39   :  { %1148 = shalt.err (!%p1145_p10)
}
  0x3a   :  { %82 = dma.hbm_to_vmem [thread:$0]  %s1325_s7, 4096, %s77_s20, [#allocation10], %s1203_s6, %s1203_s6, %s1204_s16  }
  0x3b   :  { %s1157_s24 = scalar_lea.vmem %s90_s22, 32  ;;  %p1162_p12 = scmp.lt.s32.totalorder %s90_s22, %s90_s22 }
  0x3c   :  { %p1158_p11 = scmp.ne.s32.totalorder %s90_s22, %s1157_s24  ;;  %p1163_p13 = scmp.lt.s32.totalorder %s1157_s24, %s1157_s24 }
  0x3e   :  { %p1164_p0 = por %p1163_p13, %p1162_p12 }
  0x40   :  { %p1165_p1 = pnand %p1164_p0, %p1158_p11 }
  0x42   :  { %1168 = shalt.err (!%p1165_p1)
}
  0x43   :  { %92 = dma.hbm_to_vmem [thread:$0]  %s1326_s8, 32, %s90_s22, [#allocation13]  }
  0x44   :  { %1189 = dma.done.wait [#allocation4], 128  }
  0x45   :  { %1190 = vsyncadd [#allocation4], 4294967168 }
  0x46   :  { %1191 = dma.done.wait [#allocation7], 4128  }
  0x47   :  { %1192 = vsyncadd [#allocation7], 4294963168 }
  0x48   :  { %1193 = dma.done.wait [#allocation10], 4128  }
  0x49   :  { %1194 = vsyncadd [#allocation10], 4294963168 }
  0x4a   :  { %1195 = dma.done.wait [#allocation13], 32  }
  0x4b   :  { %1196 = vsyncadd [#allocation13], 4294967264  ;;  %v1207_v1 = vmov 0   ;;  %vm198_vm0 = vcmask 1040384   ;;  %v121_v2 = vld [vmem:[#allocation3] sm:$0x77] }
  0x4c   :  { %170 = vmatprep.mubr.bf16.mxu0 %v1207_v1  ;;  %239 = vmatprep.mubr.bf16.mxu1 %v1207_v1  ;;  %vm131_vm1 = vcmask 1042432   ;;  %v119_v3 = vld [vmem:[%s1320_s2 + $0x10] sm:$0x11]  ;;  %v200_v4 = vsel %vm198_vm0, 65535, %v1207_v1  ;;  %v861_v5 = vcombine.high %v121_v2, %v121_v2  ;;  %v860_v6 = vcombine.low %v121_v2, %v121_v2  ;;  %v120_v9 = vld [vmem:[%s1319_s1] sm:$0x3] }
  0x4d   :  { %945 = vset.pattern.permute.xlu0 %v1207_v1  ;;  %v867_v7 = vcombine.high %v119_v3, %v119_v3  ;;  %v866_v8 = vcombine.low %v119_v3, %v119_v3  ;;  %v950_v13 = vld [vmem:[%s1320_s2 + $0x4] ss:$8 sps:$4 sm:$0xff]   ;;  %vm127_vm2 = vcmask 48128   ;;  %v952_v17 = vld [vmem:[%s1320_s2] ss:$8 sps:$4 sm:$0xff]   ;;  %vm194_vm3 = vcmask 138240  }
  0x4e   :  { %862 = vmatprep.subr.msk.bf16.mxu0 %vm131_vm1, %v861_v5  ;;  %v133_v10 = vsel %vm131_vm1, %v860_v6, 0  ;;  %v955_v14 = vld [vmem:[#allocation8 + $0x74] ss:$8 sps:$4 sm:$0xff]   ;;  %v953_v15 = vld [vmem:[#allocation8 + $0x70] ss:$8 sps:$4 sm:$0xff]   ;;  %vm840_vm4 = vcmask 24576  }
  0x4f   :  { %v205_v11 = vand.u32 %v867_v7, %v200_v4  ;;  %v202_v12 = vand.u32 %v866_v8, %v200_v4  ;;  %153 = vmatpush1.bf16.msra.mxu0 %v133_v10  ;;  %v958_v16 = vld [vmem:[#allocation8 + $0x64] ss:$8 sps:$4 sm:$0xff]   ;;  %v956_v18 = vld [vmem:[#allocation8 + $0x60] ss:$8 sps:$4 sm:$0xff]   ;;  %v961_v19 = vld [vmem:[#allocation8 + $0x54] ss:$8 sps:$4 sm:$0xff]  }
  0x50   :  { %470 = vmatprep.subr.bf16.mxu0 %v955_v14  ;;  %v116_v20 = vld [vmem:[%s1318_s0] sm:$0x3]  ;;  %v959_v21 = vld [vmem:[#allocation8 + $0x50] ss:$8 sps:$4 sm:$0xff]   ;;  %v964_v22 = vld [vmem:[#allocation8 + $0x44] ss:$8 sps:$4 sm:$0xff]  }
  0x51   :  { %219 = vmatprep.subr.bf16.mxu1 %v205_v11  ;;  %v962_v23 = vld [vmem:[#allocation8 + $0x40] ss:$8 sps:$4 sm:$0xff]   ;;  %v967_v24 = vld [vmem:[#allocation8 + $0x34] ss:$8 sps:$4 sm:$0xff]   ;;  %v965_v25 = vld [vmem:[#allocation8 + $0x30] ss:$8 sps:$4 sm:$0xff]  }
  0x52   :  { %220 = vmatpush1.bf16.msra.mxu1 %v202_v12  ;;  %863 = vmatmul.mubr.msk.bf16.vlgmr.msra.gmra.mxu0 %vm127_vm2, %v120_v9  ;;  %v970_v26 = vld [vmem:[#allocation8 + $0x24] ss:$8 sps:$4 sm:$0xff]   ;;  %v968_v27 = vld [vmem:[#allocation8 + $0x20] ss:$8 sps:$4 sm:$0xff]   ;;  %v973_v28 = vld [vmem:[#allocation8 + $0x14] ss:$8 sps:$4 sm:$0xff]   ;;  %v250_v12 = vlaneseq }
  0x53   :  { %221 = vmatprep.subr.bf16.mxu1 %v950_v13  ;;  %471 = vmatpush1.bf16.msra.mxu0 %v953_v15  ;;  %v971_v29 = vld [vmem:[#allocation8 + $0x10] ss:$8 sps:$4 sm:$0xff]   ;;  %v976_v30 = vld [vmem:[#allocation8 + $0x4] ss:$8 sps:$4 sm:$0xff]   ;;  %v974_v31 = vld [vmem:[#allocation8] ss:$8 sps:$4 sm:$0xff]  }
  0x54   :  { %472 = vmatprep.subr.bf16.mxu0 %v958_v16  ;;  %v979_v32 = vld [vmem:[#allocation8 + $0xf4] ss:$8 sps:$4 sm:$0xff]   ;;  %v977_v33 = vld [vmem:[#allocation8 + $0xf0] ss:$8 sps:$4 sm:$0xff]   ;;  %v982_v34 = vld [vmem:[#allocation8 + $0xe4] ss:$8 sps:$4 sm:$0xff]  }
  0x55   :  { %v980_v35 = vld [vmem:[#allocation8 + $0xe0] ss:$8 sps:$4 sm:$0xff]   ;;  %v985_v36 = vld [vmem:[#allocation8 + $0xd4] ss:$8 sps:$4 sm:$0xff]   ;;  %v983_v37 = vld [vmem:[#allocation8 + $0xd0] ss:$8 sps:$4 sm:$0xff]  }
  0x56   :  { %222 = vmatpush1.bf16.msra.mxu1 %v952_v17  ;;  %v988_v38 = vld [vmem:[#allocation8 + $0xc4] ss:$8 sps:$4 sm:$0xff]   ;;  %v986_v39 = vld [vmem:[#allocation8 + $0xc0] ss:$8 sps:$4 sm:$0xff]   ;;  %v991_v40 = vld [vmem:[#allocation8 + $0xb4] ss:$8 sps:$4 sm:$0xff]  }
  0x57   :  { %473 = vmatpush1.bf16.msra.mxu0 %v956_v18  ;;  %v989_v41 = vld [vmem:[#allocation8 + $0xb0] ss:$8 sps:$4 sm:$0xff]   ;;  %v994_v42 = vld [vmem:[#allocation8 + $0xa4] ss:$8 sps:$4 sm:$0xff]   ;;  %v992_v43 = vld [vmem:[#allocation8 + $0xa0] ss:$8 sps:$4 sm:$0xff]  }
  0x58   :  { %474 = vmatprep.subr.bf16.mxu0 %v961_v19  ;;  %v997_v44 = vld [vmem:[#allocation8 + $0x94] ss:$8 sps:$4 sm:$0xff]   ;;  %v995_v45 = vld [vmem:[#allocation8 + $0x90] ss:$8 sps:$4 sm:$0xff]   ;;  %v1000_v46 = vld [vmem:[#allocation8 + $0x84] ss:$8 sps:$4 sm:$0xff]  }
  0x59   :  { %868 = vmatmul.mubr.msk.bf16.vlgmr.msra.gmra.mxu1 %vm194_vm3, %v116_v20  ;;  %v998_v47 = vld [vmem:[#allocation8 + $0x80] ss:$8 sps:$4 sm:$0xff]   ;;  %v1001_v48 = vld [vmem:[#allocation11 + $0x70] ss:$8 sps:$4 sm:$0xff]   ;;  %v251_v13 = vshrl.u32 %v250_v12, 7 }
  0x5a   :  { %v1003_v49 = vld [vmem:[#allocation11 + $0x74] ss:$8 sps:$4 sm:$0xff]   ;;  %v1006_v50 = vld [vmem:[#allocation11 + $0x64] ss:$8 sps:$4 sm:$0xff]   ;;  %v1004_v51 = vld [vmem:[#allocation11 + $0x60] ss:$8 sps:$4 sm:$0xff]  }
  0x5b   :  { %475 = vmatpush1.bf16.msra.mxu0 %v959_v21  ;;  %719 = vmatprep.subr.bf16.mxu1 %v1003_v49  ;;  %v1009_v52 = vld [vmem:[#allocation11 + $0x54] ss:$8 sps:$4 sm:$0xff]   ;;  %v1007_v53 = vld [vmem:[#allocation11 + $0x50] ss:$8 sps:$4 sm:$0xff]   ;;  %v1012_v54 = vld [vmem:[#allocation11 + $0x44] ss:$8 sps:$4 sm:$0xff]  }
  0x5c   :  { %476 = vmatprep.subr.bf16.mxu0 %v964_v22  ;;  %720 = vmatpush1.bf16.msra.mxu1 %v1001_v48  ;;  %v1010_v55 = vld [vmem:[#allocation11 + $0x40] ss:$8 sps:$4 sm:$0xff]   ;;  %v1015_v56 = vld [vmem:[#allocation11 + $0x34] ss:$8 sps:$4 sm:$0xff]   ;;  %v1013_v57 = vld [vmem:[#allocation11 + $0x30] ss:$8 sps:$4 sm:$0xff]  }
  0x5d   :  { %721 = vmatprep.subr.bf16.mxu1 %v1006_v50  ;;  %v1018_v58 = vld [vmem:[#allocation11 + $0x24] ss:$8 sps:$4 sm:$0xff]   ;;  %v1016_v59 = vld [vmem:[#allocation11 + $0x20] ss:$8 sps:$4 sm:$0xff]   ;;  %v1021_v60 = vld [vmem:[#allocation11 + $0x14] ss:$8 sps:$4 sm:$0xff]  }
  0x5e   :  { %v1019_v61 = vld [vmem:[#allocation11 + $0x10] ss:$8 sps:$4 sm:$0xff]   ;;  %v1024_v62 = vld [vmem:[#allocation11 + $0x4] ss:$8 sps:$4 sm:$0xff]   ;;  %v1022_v63 = vld [vmem:[#allocation11] ss:$8 sps:$4 sm:$0xff]  }
  0x5f   :  { %477 = vmatpush1.bf16.msra.mxu0 %v962_v23  ;;  %v1027_v0 = vld [vmem:[#allocation11 + $0xf4] ss:$8 sps:$4 sm:$0xff]   ;;  %v1025_v1 = vld [vmem:[#allocation11 + $0xf0] ss:$8 sps:$4 sm:$0xff]   ;;  %v1030_v2 = vld [vmem:[#allocation11 + $0xe4] ss:$8 sps:$4 sm:$0xff]  }
  0x60   :  { %478 = vmatprep.subr.bf16.mxu0 %v967_v24  ;;  %722 = vmatpush1.bf16.msra.mxu1 %v1004_v51  ;;  %v1028_v3 = vld [vmem:[#allocation11 + $0xe0] ss:$8 sps:$4 sm:$0xff]   ;;  %v1033_v4 = vld [vmem:[#allocation11 + $0xd4] ss:$8 sps:$4 sm:$0xff]   ;;  %v1031_v5 = vld [vmem:[#allocation11 + $0xd0] ss:$8 sps:$4 sm:$0xff]  }
  0x61   :  { %723 = vmatprep.subr.bf16.mxu1 %v1009_v52  ;;  %v1036_v6 = vld [vmem:[#allocation11 + $0xc4] ss:$8 sps:$4 sm:$0xff]   ;;  %v1034_v7 = vld [vmem:[#allocation11 + $0xc0] ss:$8 sps:$4 sm:$0xff]   ;;  %v1039_v8 = vld [vmem:[#allocation11 + $0xb4] ss:$8 sps:$4 sm:$0xff]  }
  0x62   :  { %v1037_v9 = vld [vmem:[#allocation11 + $0xb0] ss:$8 sps:$4 sm:$0xff]   ;;  %v1042_v10 = vld [vmem:[#allocation11 + $0xa4] ss:$8 sps:$4 sm:$0xff]   ;;  %v1040_v11 = vld [vmem:[#allocation11 + $0xa0] ss:$8 sps:$4 sm:$0xff]  }
  0x63   :  { %479 = vmatpush1.bf16.msra.mxu0 %v965_v25  ;;  %v1306_v15 = vsub.s32 0, %v251_v13  ;;  %v248_v17 = vld [vmem:[#allocation6] sm:$0x3]  ;;  %v256_v18 = vsub.s32 1, %v251_v13  ;;  %v1208_v52 = vmov 1966171168  }
  0x64   :  { %480 = vmatprep.subr.bf16.mxu0 %v970_v26  ;;  %724 = vmatpush1.bf16.msra.mxu1 %v1007_v53  ;;  %v785_v53 = vunpack.c.l.s4 %v1208_v52 }
  0x65   :  { %725 = vmatprep.subr.bf16.mxu1 %v1012_v54  ;;  %v253_v20 = vrot.slane %v248_v17, %v1306_v15  ;;  %v257_v24 = vrot.slane %v248_v17, %v256_v18  ;;  %v933_v54 = vld.sshfl [vmem:[%s1327_s9] sm:$0x11 pattern:$0x75316420]  ;;  %s1209_s9 = smov [#allocation14]  }
  0x66   :  { %s848_s4 = sshll.u32 %s1209_s9, 4  ;;  %s849_s4 = int_to_ptr.vmem [resolvable:$true] %s848_s4 }
  0x67   :  { %481 = vmatpush1.bf16.msra.mxu0 %v968_v27  ;;  %s1169_s14 = scalar_lea.vmem %s849_s4, 16  ;;  %s1173_s15 = scalar_lea.vmem %s849_s4, 32 }
  0x68   :  { %482 = vmatprep.subr.bf16.mxu0 %v973_v28  ;;  %726 = vmatpush1.bf16.msra.mxu1 %v1010_v55  ;;  %v786_v55 = vunpack.c.0.s8 %v785_v53  ;;  %p1170_p2 = scmp.ne.s32.totalorder %s849_s4, %s1169_s14  ;;  %p1174_p3 = scmp.lt.s32.totalorder %s849_s4, %s849_s4 }
  0x69   :  { %727 = vmatprep.subr.bf16.mxu1 %v1015_v56  ;;  %v783_v56 = vcombine.high %v933_v54, %v933_v54  ;;  %p1175_p4 = scmp.lt.s32.totalorder %s1173_s15, %s1169_s14 }
  0x6b   :  { %483 = vmatpush1.bf16.msra.mxu0 %v971_v29  ;;  %p1176_p5 = por %p1175_p4, %p1174_p3 }
  0x6c   :  { %484 = vmatprep.subr.bf16.mxu0 %v976_v30  ;;  %728 = vmatpush1.bf16.msra.mxu1 %v1013_v57  ;;  %v789_v57 = vsub.s32 %v786_v55, %v251_v13 }
  0x6d   :  { %729 = vmatprep.subr.bf16.mxu1 %v1018_v58  ;;  %p1177_p6 = pnand %p1176_p5, %p1170_p2 }
  0x6e   :  { %v797_v58 = vrot.slane %v783_v56, %v789_v57 }
  0x6f   :  { %485 = vmatpush1.bf16.msra.mxu0 %v974_v31 }
  0x70   :  { %486 = vmatprep.subr.bf16.mxu0 %v979_v32  ;;  %730 = vmatpush1.bf16.msra.mxu1 %v1016_v59  ;;  %v790_v59 = vrot.slane %v933_v54, %v789_v57 }
  0x71   :  { %731 = vmatprep.subr.bf16.mxu1 %v1021_v60  ;;  %v765_v60 = vld [vmem:[#allocation2] sm:$0x1] }
  0x72   :  { %768 = vperm.xlu0 %945, %v765_v60  }
  0x73   :  { %487 = vmatpush2.bf16.msra.mxu0 %v977_v33 }
  0x74   :  { %488 = vmatprep.subr.bf16.mxu0 %v982_v34  ;;  %732 = vmatpush1.bf16.msra.mxu1 %v1019_v61  ;;  %v547_v61 = vld [vmem:[#allocation12] sm:$0x3] }
  0x75   :  { %733 = vmatprep.subr.bf16.mxu1 %v1024_v62  ;;  %v552_v62 = vrot.slane %v547_v61, %v1306_v15 }
  0x77   :  { %489 = vmatpush2.bf16.msra.mxu0 %v980_v35  ;;  %v1045_v35 = vld [vmem:[#allocation11 + $0x94] ss:$8 sps:$4 sm:$0xff]  }
  0x78   :  { %490 = vmatprep.subr.bf16.mxu0 %v985_v36  ;;  %734 = vmatpush1.bf16.msra.mxu1 %v1022_v63  ;;  %v1043_v36 = vld [vmem:[#allocation11 + $0x90] ss:$8 sps:$4 sm:$0xff]   ;;  %v556_v63 = vrot.slane %v547_v61, %v256_v18 }
  0x79   :  { %735 = vmatprep.subr.bf16.mxu1 %v1027_v0 }
  0x7b   :  { %491 = vmatpush2.bf16.msra.mxu0 %v983_v37  ;;  %v1048_v37 = vld [vmem:[#allocation11 + $0x84] ss:$8 sps:$4 sm:$0xff]  }
  0x7c   :  { %492 = vmatprep.subr.bf16.mxu0 %v988_v38  ;;  %736 = vmatpush2.bf16.msra.mxu1 %v1025_v1  ;;  %v1046_v38 = vld [vmem:[#allocation11 + $0x80] ss:$8 sps:$4 sm:$0xff]  }
  0x7d   :  { %737 = vmatprep.subr.bf16.mxu1 %v1030_v2 }
  0x7f   :  { %493 = vmatpush2.bf16.msra.mxu0 %v986_v39  ;;  %v298_v39 = vld [vmem:[#allocation9] sm:$0x3] }
  0x80   :  { %494 = vmatprep.subr.bf16.mxu0 %v991_v40  ;;  %738 = vmatpush2.bf16.msra.mxu1 %v1028_v3  ;;  %v303_v40 = vrot.slane %v298_v39, %v1306_v15 }
  0x81   :  { %739 = vmatprep.subr.bf16.mxu1 %v1033_v4 }
  0x83   :  { %495 = vmatpush2.bf16.msra.mxu0 %v989_v41  ;;  %v307_v41 = vrot.slane %v298_v39, %v256_v18 }
  0x84   :  { %496 = vmatprep.subr.bf16.mxu0 %v994_v42  ;;  %740 = vmatpush2.bf16.msra.mxu1 %v1031_v5 }
  0x85   :  { %741 = vmatprep.subr.bf16.mxu1 %v1036_v6 }
  0x87   :  { %497 = vmatpush2.bf16.msra.mxu0 %v992_v43 }
  0x88   :  { %498 = vmatprep.subr.bf16.mxu0 %v997_v44  ;;  %742 = vmatpush2.bf16.msra.mxu1 %v1034_v7 }
  0x89   :  { %743 = vmatprep.subr.bf16.mxu1 %v1039_v8 }
  0x8b   :  { %499 = vmatpush2.bf16.msra.mxu0 %v995_v45 }
  0x8c   :  { %500 = vmatprep.subr.bf16.mxu0 %v1000_v46  ;;  %744 = vmatpush2.bf16.msra.mxu1 %v1037_v9 }
  0x8d   :  { %745 = vmatprep.subr.bf16.mxu1 %v1042_v10 }
  0x8f   :  { %501 = vmatpush2.bf16.msra.mxu0 %v998_v47 }
  0x90   :  { %746 = vmatpush2.bf16.msra.mxu1 %v1040_v11 }
  0x91   :  { %747 = vmatprep.subr.bf16.mxu1 %v1045_v35 }
  0x94   :  { %748 = vmatpush2.bf16.msra.mxu1 %v1043_v36 }
  0x95   :  { %749 = vmatprep.subr.bf16.mxu1 %v1048_v37 }
  0x98   :  { %750 = vmatpush2.bf16.msra.mxu1 %v1046_v38 }
  0xed   :  { %v769_v10 = vpop.permute.xlu0 %768 }
  0xee   :  { %v774_v11 = vrot.slane %v769_v10, %v1306_v15 }
 0x112   :  { %v172_v14 = vpop.f32.mrf.mxu0 }
 0x114   :  { %v174_v16 = vpop.f32.mrf.mxu0 }
 0x116   :  { %v176_v19 = vpop.f32.mrf.mxu0 }
 0x118   :  { %v177_v21 = vpop.f32.mrf.mxu0 }
 0x119   :  { %v241_v22 = vpop.f32.mrf.mxu1 }
 0x11a   :  { %v242_v23 = vadd.f32 %v241_v22, %v172_v14 }
 0x11b   :  { %v243_v25 = vpop.f32.mrf.mxu1 }
 0x11c   :  { %v260_v26 = vadd.f32 %v253_v20, %v242_v23  ;;  %v244_v27 = vadd.f32 %v243_v25, %v174_v16 }
 0x11d   :  { %v245_v28 = vpop.f32.mrf.mxu1 }
 0x11e   :  { %v261_v29 = vadd.f32 %v257_v24, %v244_v27  ;;  %v262_v30 = vmax.f32 %v260_v26, 0.0 }
 0x11f   :  { %v246_v31 = vpop.f32.mrf.mxu1 }
 0x120   :  { %v263_v32 = vmax.f32 %v261_v29, 0.0  ;;  %v264_v34 = vpack.c.bf16 %v262_v30, %v262_v30 }
 0x122   :  { %v265_v33 = vpack.c.bf16 %v263_v32, %v263_v32 }
 0x124   :  { %502 = vmatprep.mubr.bf16.mxu0 %v265_v33 }
 0x125   :  { %503 = vmatmul.mubr.bf16.vlgmr.msra.gmra.mxu0 %v264_v34 }
 0x126   :  { %832 = vmatprep.mubr.bf16.mxu0 %v797_v58 }
 0x1e5   :  { %v504_v42 = vpop.f32.mrf.mxu0 }
 0x1e6   :  { %v505_v43 = vadd.f32 %v504_v42, %v303_v40 }
 0x1e7   :  { %v506_v44 = vpop.f32.mrf.mxu0 }
 0x1e8   :  { %v507_v45 = vadd.f32 %v506_v44, %v307_v41  ;;  %v511_v46 = vmax.f32 %v505_v43, 0.0 }
 0x1e9   :  { %v508_v47 = vpop.f32.mrf.mxu0 }
 0x1ea   :  { %v512_v48 = vmax.f32 %v507_v45, 0.0  ;;  %v513_v51 = vpack.c.bf16 %v511_v46, %v511_v46 }
 0x1eb   :  { %v509_v49 = vpop.f32.mrf.mxu0 }
 0x1ec   :  { %v514_v50 = vpack.c.bf16 %v512_v48, %v512_v48 }
 0x1ee   :  { %751 = vmatprep.mubr.bf16.mxu1 %v514_v50 }
 0x1ef   :  { %752 = vmatmul.mubr.bf16.vlgmr.msra.gmra.mxu1 %v513_v51 }
 0x2af   :  { %v753_v0 = vpop.f32.mrf.mxu1 }
 0x2b0   :  { %v754_v1 = vadd.f32 %v753_v0, %v552_v62 }
 0x2b1   :  { %v755_v2 = vpop.f32.mrf.mxu1 }
 0x2b2   :  { %v756_v3 = vadd.f32 %v755_v2, %v556_v63  ;;  %v760_v4 = vmax.f32 %v754_v1, 0.0 }
 0x2b3   :  { %v757_v5 = vpop.f32.mrf.mxu1 }
 0x2b4   :  { %v761_v6 = vmax.f32 %v756_v3, 0.0  ;;  %v762_v9 = vpack.c.bf16 %v760_v4, %v760_v4 }
 0x2b5   :  { %v758_v7 = vpop.f32.mrf.mxu1 }
 0x2b6   :  { %v763_v8 = vpack.c.bf16 %v761_v6, %v761_v6 }
 0x2b8   :  { %814 = vmatprep.subr.bf16.mxu0 %v763_v8 }
 0x2b9   :  { %815 = vmatpush1.bf16.xpose.msra.mxu0 %v762_v9 }
 0x2c0   :  { %833 = vmatmul.mubr.bf16.vlgmr.msra.gmra.mxu0 %v790_v59 }
 0x380   :  { %v834_v12 = vpop.f32.mrf.mxu0 }
 0x381   :  { %v835_v13 = vadd.f32 %v834_v12, %v774_v11 }
 0x382   :  { %v836_v14 = vpop.f32.mrf.mxu0 }
 0x383   :  { %841 = vst.msk [vmem:[#allocation14] sm:$0x1] %vm840_vm4, %v835_v13 }
 0x384   :  { %v837_v16 = vpop.f32.mrf.mxu0 }
 0x385   :  { %1180 = shalt.err (!%p1177_p6)
}
 0x386   :  { %851 = dma.vmem_to_hbm [thread:$0]  %s849_s4, 16, %s1329_s11, [#allocation5]   ;;  %v838_v15 = vpop.f32.mrf.mxu0 }
 0x387   :  { %1197 = dma.done.wait [#allocation5], 16  }
 0x388   :  { %1198 = vsyncadd [#allocation5], 4294967280 }
 0x389   :  { %855 = vsyncpa [#allocation4], 1 }
 0x38a   :  { %856 = vsyncpa [#allocation7], 1 }
 0x38b   :  { %857 = vsyncpa [#allocation10], 1 }
 0x38c   :  { %858 = vsyncpa [#allocation13], 1 }
 0x38d   :  { %859 = vsyncpa [#allocation5], 1 }

</bundles_post_ra>
